<compile_context>
chip_gen: v7x
topology: tpu7x:2x2x1
jax: 0.10.0
libtpu: 0.0.40
codegen_flags: <defaults>
</compile_context>

<pallas_src>
import functools

import jax
import jax.numpy as jnp
from jax import lax
from jax.experimental import pallas as pl
from jax.experimental.pallas import tpu as pltpu


def _cgn_kernel(eps, inv_cnt,
                xr_ref, xi_ref, wr_ref, wi_ref, br_ref, bi_ref,
                or_ref, oi_ref):
    """One grid step: a (TN, TG) tile of (sample, group) cells, both planes.

    Block last axis is the collapsed per-cell reduction domain L = Cg*S.
    """

    def _norm(x_ref, w_ref, b_ref, o_ref):
        x = x_ref[...]                                          # (TN, TG, L) f32
        mean = jnp.sum(x, axis=-1, keepdims=True) * inv_cnt     # (TN, TG, 1)
        # Centered (numerically safe) biased variance; the (x - mean) here is
        # consumed by the reduction and is not reused for the output.
        var = jnp.sum(jnp.square(x - mean), axis=-1, keepdims=True) * inv_cnt
        rstd = lax.rsqrt(var + eps)                             # (TN, TG, 1)
        # Fold mean into the affine: out = x*scale + shift (one FMA vs x).
        scale = rstd * w_ref[...][None]                         # (TN, TG, L)
        shift = b_ref[...][None] - mean * scale
        o_ref[...] = x * scale + shift

    _norm(xr_ref, wr_ref, br_ref, or_ref)
    _norm(xi_ref, wi_ref, bi_ref, oi_ref)


def _round_up(a, m):
    return (a + m - 1) // m * m


def _vmem_capacity_bytes():
    try:
        cap = getattr(pltpu.get_tpu_info(), "vmem_capacity_bytes", None)
        if cap:
            return int(cap)
    except Exception:
        pass
    return 64 * 1024 * 1024          # conservative fallback (v7x per-TensorCore)


def _pick_tiles(N, G, L, block_budget):
    """Pick (TN, TG) so one (TN, TG, L) block fits ~block_budget bytes."""
    lane_bytes = _round_up(L, 128) * 4
    TG = 8 if G >= 8 else G                       # sublane-friendly group tile
    TN = max(1, min(N, block_budget // max(1, _round_up(TG, 8) * lane_bytes)))
    if TN == N and G > TG:
        # Whole batch fits: widen the group tile in sublane-friendly steps of 8.
        widened = (block_budget // max(1, N * lane_bytes)) // 8 * 8
        TG = min(G, max(TG, widened))

    def steps(tn, tg):
        return pl.cdiv(G, tg) * pl.cdiv(N, tn)

    # Keep >= ~8 grid steps (feeds both v7x TensorCores / pipeline depth) as
    # long as blocks stay comfortably large (>= ~1 MiB).
    while steps(TN, TG) < 8:
        new_tn = (TN + 1) // 2
        if new_tn == TN:
            break
        if new_tn * _round_up(TG, 8) * lane_bytes < (1 << 20):
            break
        TN = new_tn
    return TN, TG


def complex_group_norm(x, num_groups, weight, bias, eps=1e-5):
    """Pallas complex GroupNorm. x: (N, C, *spatial) complex64."""
    N, C = x.shape[0], x.shape[1]
    assert C % num_groups == 0, "num_channels must be divisible by num_groups"
    G = num_groups
    Cg = C // G
    S = 1
    for d in x.shape[2:]:
        S *= d
    L = Cg * S

    if weight is None:
        weight = jnp.ones((C,), jnp.complex64)
    if bias is None:
        bias = jnp.zeros((C,), jnp.complex64)

    # Planar f32 views of the complex planes (no stacked staging buffer).
    xr = jnp.real(x).astype(jnp.float32).reshape(N, G, L)
    xi = jnp.imag(x).astype(jnp.float32).reshape(N, G, L)

    # Per-channel affine expanded over the collapsed (Cg*S) axis -> (G, L).
    def _expand(p):
        return jnp.repeat(p.astype(jnp.float32).reshape(G, Cg), S, axis=1)

    wr = _expand(jnp.real(weight))
    wi = _expand(jnp.imag(weight))
    br = _expand(jnp.real(bias))
    bi = _expand(jnp.imag(bias))

    # ---- Generation-aware block sizing.
    vmem_cap = _vmem_capacity_bytes()
    vmem_limit = min(vmem_cap * 3 // 4, 96 * 1024 * 1024)
    # Per step: 2 planes x (in + out) x double-buffer = 8 block buffers, plus
    # params and elementwise transients -> budget ~1/14 of the scoped limit.
    block_budget = max(1 << 19, vmem_limit // 14)
    TN, TG = _pick_tiles(N, G, L, block_budget)

    block_bytes = TN * _round_up(TG, 8) * _round_up(L, 128) * 4
    param_bytes = _round_up(TG, 8) * _round_up(L, 128) * 4
    need = 11 * block_bytes + 8 * param_bytes + (2 << 20)
    vmem_limit = int(min(vmem_cap, max(vmem_limit, need)))

    x_spec = pl.BlockSpec((TN, TG, L), lambda gi, ni: (ni, gi, 0))
    p_spec = pl.BlockSpec((TG, L), lambda gi, ni: (gi, 0))   # fixed over inner ni

    out_r, out_i = pl.pallas_call(
        functools.partial(_cgn_kernel, float(eps), 1.0 / float(L)),
        out_shape=(jax.ShapeDtypeStruct((N, G, L), jnp.float32),
                   jax.ShapeDtypeStruct((N, G, L), jnp.float32)),
        grid_spec=pltpu.PrefetchScalarGridSpec(
            num_scalar_prefetch=0,
            grid=(pl.cdiv(G, TG), pl.cdiv(N, TN)),   # sample tiles innermost
            in_specs=[x_spec, x_spec, p_spec, p_spec, p_spec, p_spec],
            out_specs=[x_spec, x_spec],
        ),
        compiler_params=pltpu.CompilerParams(
            dimension_semantics=("parallel", "parallel"),
            vmem_limit_bytes=vmem_limit),
    )(xr, xi, wr, wi, br, bi)

    # TODO(synk): merge pass back into the complex container (see header note).
    return lax.complex(out_r, out_i).reshape(x.shape)


def _reference_group_norm(x, num_groups, weight, bias, eps=1e-5):
    """Pure-JAX reference (same naive complex GN semantics)."""
    N, C = x.shape[0], x.shape[1]

    def gn(v, w, b):
        vr = v.reshape(N, num_groups, -1)
        mean = vr.mean(axis=-1, keepdims=True)
        var = jnp.square(vr - mean).mean(axis=-1, keepdims=True)
        y = ((vr - mean) / jnp.sqrt(var + eps)).reshape(v.shape)
        bshape = (1, C) + (1,) * (v.ndim - 2)
        return y * w.reshape(bshape) + b.reshape(bshape)

    real = gn(jnp.real(x).astype(jnp.float32),
              jnp.real(weight).astype(jnp.float32),
              jnp.real(bias).astype(jnp.float32))
    imag = gn(jnp.imag(x).astype(jnp.float32),
              jnp.imag(weight).astype(jnp.float32),
              jnp.imag(bias).astype(jnp.float32))
    return (real + 1j * imag).astype(jnp.complex64)


if __name__ == "__main__":
    num_groups = 2
    num_channels = 4
    N, H, W = 2, 16, 16
    eps = 1e-5

    key = jax.random.PRNGKey(0)
    kxr, kxi, kwr, kwi, kbr, kbi = jax.random.split(key, 6)

    x = (jax.random.normal(kxr, (N, num_channels, H, W), dtype=jnp.float32)
         + 1j * jax.random.normal(kxi, (N, num_channels, H, W), dtype=jnp.float32)
         ).astype(jnp.complex64)

    # Parameter shapes from __init__: complex weight/bias of size (num_channels,).
    # reset_parameters() would give weight = 1+0j, bias = 0+0j; use non-trivial
    # deterministic values to exercise the affine path.
    weight = (jax.random.normal(kwr, (num_channels,), dtype=jnp.float32)
              + 1j * jax.random.normal(kwi, (num_channels,), dtype=jnp.float32)
              ).astype(jnp.complex64)
    bias = (jax.random.normal(kbr, (num_channels,), dtype=jnp.float32)
            + 1j * jax.random.normal(kbi, (num_channels,), dtype=jnp.float32)
            ).astype(jnp.complex64)

    out = complex_group_norm(x, num_groups, weight, bias, eps)
    out = jax.block_until_ready(out)

    ref = _reference_group_norm(x, num_groups, weight, bias, eps)
    assert out.shape == x.shape and out.dtype == jnp.complex64
    assert jnp.allclose(out, ref, atol=1e-4, rtol=1e-4), "mismatch vs reference"

    print("KERNEL_OK")
</pallas_src>

<mosaic_0001>
module attributes {stable_mosaic.version = 11 : i64} {
  func.func @_cgn_kernel(%arg0: i32, %arg1: i32, %arg2: memref<2x2x512xf32, #tpu.memory_space<vmem>>, %arg3: memref<2x2x512xf32, #tpu.memory_space<vmem>>, %arg4: memref<2x512xf32, #tpu.memory_space<vmem>>, %arg5: memref<2x512xf32, #tpu.memory_space<vmem>>, %arg6: memref<2x512xf32, #tpu.memory_space<vmem>>, %arg7: memref<2x512xf32, #tpu.memory_space<vmem>>, %arg8: memref<2x2x512xf32, #tpu.memory_space<vmem>>, %arg9: memref<2x2x512xf32, #tpu.memory_space<vmem>>) attributes {dimension_semantics = [#tpu.dimension_semantics<parallel>, #tpu.dimension_semantics<parallel>], iteration_bounds = array<i64: 1, 1>, scalar_prefetch = 0 : i64, scratch_operands = 0 : i64, tpu.core_type = #tpu.core_type<tc>, window_params = [{transform_indices = @transform_0, window_bounds = array<i64: 2, 2, 512>}, {transform_indices = @transform_1, window_bounds = array<i64: 2, 2, 512>}, {transform_indices = @transform_2, window_bounds = array<i64: 2, 512>}, {transform_indices = @transform_3, window_bounds = array<i64: 2, 512>}, {transform_indices = @transform_4, window_bounds = array<i64: 2, 512>}, {transform_indices = @transform_5, window_bounds = array<i64: 2, 512>}, {transform_indices = @transform_6, window_bounds = array<i64: 2, 2, 512>}, {transform_indices = @transform_7, window_bounds = array<i64: 2, 2, 512>}]} {
    %c0 = arith.constant 0 : index
    %c0_0 = arith.constant 0 : index
    %c0_1 = arith.constant 0 : index
    %0 = vector.load %arg2[%c0, %c0_0, %c0_1] : memref<2x2x512xf32, #tpu.memory_space<vmem>>, vector<2x2x512xf32>
    %cst = arith.constant dense<0.000000e+00> : vector<2x2xf32>
    %1 = vector.multi_reduction <add>, %0, %cst [2] : vector<2x2x512xf32> to vector<2x2xf32>
    %2 = vector.shape_cast %1 : vector<2x2xf32> to vector<2x2x1xf32>
    %cst_2 = arith.constant 0.001953125 : f32
    %3 = vector.broadcast %cst_2 : f32 to vector<2x2x1xf32>
    %4 = arith.mulf %2, %3 : vector<2x2x1xf32>
    %5 = vector.broadcast %4 : vector<2x2x1xf32> to vector<2x2x512xf32>
    %6 = arith.subf %0, %5 : vector<2x2x512xf32>
    %7 = arith.mulf %6, %6 : vector<2x2x512xf32>
    %cst_3 = arith.constant dense<0.000000e+00> : vector<2x2xf32>
    %8 = vector.multi_reduction <add>, %7, %cst_3 [2] : vector<2x2x512xf32> to vector<2x2xf32>
    %9 = vector.shape_cast %8 : vector<2x2xf32> to vector<2x2x1xf32>
    %cst_4 = arith.constant 0.001953125 : f32
    %10 = vector.broadcast %cst_4 : f32 to vector<2x2x1xf32>
    %11 = arith.mulf %9, %10 : vector<2x2x1xf32>
    %cst_5 = arith.constant 9.99999974E-6 : f32
    %12 = vector.broadcast %cst_5 : f32 to vector<2x2x1xf32>
    %13 = arith.addf %11, %12 : vector<2x2x1xf32>
    %14 = math.rsqrt %13 : vector<2x2x1xf32>
    %c0_6 = arith.constant 0 : index
    %c0_7 = arith.constant 0 : index
    %15 = vector.load %arg4[%c0_6, %c0_7] : memref<2x512xf32, #tpu.memory_space<vmem>>, vector<2x512xf32>
    %16 = vector.shape_cast %15 : vector<2x512xf32> to vector<1x2x512xf32>
    %17 = vector.broadcast %14 : vector<2x2x1xf32> to vector<2x2x512xf32>
    %18 = vector.broadcast %16 : vector<1x2x512xf32> to vector<2x2x512xf32>
    %19 = arith.mulf %17, %18 : vector<2x2x512xf32>
    %c0_8 = arith.constant 0 : index
    %c0_9 = arith.constant 0 : index
    %20 = vector.load %arg6[%c0_8, %c0_9] : memref<2x512xf32, #tpu.memory_space<vmem>>, vector<2x512xf32>
    %21 = vector.shape_cast %20 : vector<2x512xf32> to vector<1x2x512xf32>
    %22 = vector.broadcast %4 : vector<2x2x1xf32> to vector<2x2x512xf32>
    %23 = arith.mulf %22, %19 : vector<2x2x512xf32>
    %24 = vector.broadcast %21 : vector<1x2x512xf32> to vector<2x2x512xf32>
    %25 = arith.subf %24, %23 : vector<2x2x512xf32>
    %26 = arith.mulf %0, %19 : vector<2x2x512xf32>
    %27 = arith.addf %26, %25 : vector<2x2x512xf32>
    %c0_10 = arith.constant 0 : index
    %c0_11 = arith.constant 0 : index
    %c0_12 = arith.constant 0 : index
    %28 = vector.load %arg8[%c0_10, %c0_11, %c0_12] : memref<2x2x512xf32, #tpu.memory_space<vmem>>, vector<2x2x512xf32>
    tpu.vector_store %arg8[%c0_10, %c0_11, %c0_12], %27 {strides = array<i32>} : memref<2x2x512xf32, #tpu.memory_space<vmem>>, vector<2x2x512xf32>,
    %c0_13 = arith.constant 0 : index
    %c0_14 = arith.constant 0 : index
    %c0_15 = arith.constant 0 : index
    %29 = vector.load %arg3[%c0_13, %c0_14, %c0_15] : memref<2x2x512xf32, #tpu.memory_space<vmem>>, vector<2x2x512xf32>
    %cst_16 = arith.constant dense<0.000000e+00> : vector<2x2xf32>
    %30 = vector.multi_reduction <add>, %29, %cst_16 [2] : vector<2x2x512xf32> to vector<2x2xf32>
    %31 = vector.shape_cast %30 : vector<2x2xf32> to vector<2x2x1xf32>
    %cst_17 = arith.constant 0.001953125 : f32
    %32 = vector.broadcast %cst_17 : f32 to vector<2x2x1xf32>
    %33 = arith.mulf %31, %32 : vector<2x2x1xf32>
    %34 = vector.broadcast %33 : vector<2x2x1xf32> to vector<2x2x512xf32>
    %35 = arith.subf %29, %34 : vector<2x2x512xf32>
    %36 = arith.mulf %35, %35 : vector<2x2x512xf32>
    %cst_18 = arith.constant dense<0.000000e+00> : vector<2x2xf32>
    %37 = vector.multi_reduction <add>, %36, %cst_18 [2] : vector<2x2x512xf32> to vector<2x2xf32>
    %38 = vector.shape_cast %37 : vector<2x2xf32> to vector<2x2x1xf32>
    %cst_19 = arith.constant 0.001953125 : f32
    %39 = vector.broadcast %cst_19 : f32 to vector<2x2x1xf32>
    %40 = arith.mulf %38, %39 : vector<2x2x1xf32>
    %cst_20 = arith.constant 9.99999974E-6 : f32
    %41 = vector.broadcast %cst_20 : f32 to vector<2x2x1xf32>
    %42 = arith.addf %40, %41 : vector<2x2x1xf32>
    %43 = math.rsqrt %42 : vector<2x2x1xf32>
    %c0_21 = arith.constant 0 : index
    %c0_22 = arith.constant 0 : index
    %44 = vector.load %arg5[%c0_21, %c0_22] : memref<2x512xf32, #tpu.memory_space<vmem>>, vector<2x512xf32>
    %45 = vector.shape_cast %44 : vector<2x512xf32> to vector<1x2x512xf32>
    %46 = vector.broadcast %43 : vector<2x2x1xf32> to vector<2x2x512xf32>
    %47 = vector.broadcast %45 : vector<1x2x512xf32> to vector<2x2x512xf32>
    %48 = arith.mulf %46, %47 : vector<2x2x512xf32>
    %c0_23 = arith.constant 0 : index
    %c0_24 = arith.constant 0 : index
    %49 = vector.load %arg7[%c0_23, %c0_24] : memref<2x512xf32, #tpu.memory_space<vmem>>, vector<2x512xf32>
    %50 = vector.shape_cast %49 : vector<2x512xf32> to vector<1x2x512xf32>
    %51 = vector.broadcast %33 : vector<2x2x1xf32> to vector<2x2x512xf32>
    %52 = arith.mulf %51, %48 : vector<2x2x512xf32>
    %53 = vector.broadcast %50 : vector<1x2x512xf32> to vector<2x2x512xf32>
    %54 = arith.subf %53, %52 : vector<2x2x512xf32>
    %55 = arith.mulf %29, %48 : vector<2x2x512xf32>
    %56 = arith.addf %55, %54 : vector<2x2x512xf32>
    %c0_25 = arith.constant 0 : index
    %c0_26 = arith.constant 0 : index
    %c0_27 = arith.constant 0 : index
    %57 = vector.load %arg9[%c0_25, %c0_26, %c0_27] : memref<2x2x512xf32, #tpu.memory_space<vmem>>, vector<2x2x512xf32>
    tpu.vector_store %arg9[%c0_25, %c0_26, %c0_27], %56 {strides = array<i32>} : memref<2x2x512xf32, #tpu.memory_space<vmem>>, vector<2x2x512xf32>,
    return
  }
  func.func @transform_0(%arg0: i32, %arg1: i32) -> (i32, i32, i32) {
    %c0_i32 = arith.constant 0 : i32
    %c0_i32_0 = arith.constant 0 : i32
    return %arg1, %arg0, %c0_i32 : i32, i32, i32
  }
  func.func @transform_1(%arg0: i32, %arg1: i32) -> (i32, i32, i32) {
    %c0_i32 = arith.constant 0 : i32
    %c0_i32_0 = arith.constant 0 : i32
    return %arg1, %arg0, %c0_i32 : i32, i32, i32
  }
  func.func @transform_2(%arg0: i32, %arg1: i32) -> (i32, i32) {
    %c0_i32 = arith.constant 0 : i32
    %c0_i32_0 = arith.constant 0 : i32
    return %arg0, %c0_i32 : i32, i32
  }
  func.func @transform_3(%arg0: i32, %arg1: i32) -> (i32, i32) {
    %c0_i32 = arith.constant 0 : i32
    %c0_i32_0 = arith.constant 0 : i32
    return %arg0, %c0_i32 : i32, i32
  }
  func.func @transform_4(%arg0: i32, %arg1: i32) -> (i32, i32) {
    %c0_i32 = arith.constant 0 : i32
    %c0_i32_0 = arith.constant 0 : i32
    return %arg0, %c0_i32 : i32, i32
  }
  func.func @transform_5(%arg0: i32, %arg1: i32) -> (i32, i32) {
    %c0_i32 = arith.constant 0 : i32
    %c0_i32_0 = arith.constant 0 : i32
    return %arg0, %c0_i32 : i32, i32
  }
  func.func @transform_6(%arg0: i32, %arg1: i32) -> (i32, i32, i32) {
    %c0_i32 = arith.constant 0 : i32
    %c0_i32_0 = arith.constant 0 : i32
    return %arg1, %arg0, %c0_i32 : i32, i32, i32
  }
  func.func @transform_7(%arg0: i32, %arg1: i32) -> (i32, i32, i32) {
    %c0_i32 = arith.constant 0 : i32
    %c0_i32_0 = arith.constant 0 : i32
    return %arg1, %arg0, %c0_i32 : i32, i32, i32
  }
}

</mosaic_0001>

<bundles_post_ra>
// kernel: tpu_custom_call.1
= control target key start
LH: loop header
LB: loop body
LE: loop exit
PB: predicated region body
PF: predicated region fallthrough
CT: control target
= control target key end

     0   :  { %13 = vsyncpa [#allocation3], 0  ;;  %s1149_s0 = inlined_call_operand.hbm [shape: f32[2,2,512], index: 0, kind: input, shape index: {}]   ;;  %s1150_s1 = inlined_call_operand.hbm [shape: f32[2,2,512], index: 1, kind: input, shape index: {}]   ;;  %s1151_s2 = inlined_call_operand.hbm [shape: f32[2,512], index: 2, kind: input, shape index: {}]   ;;  %s1152_s3 = inlined_call_operand.vmem [shape: f32[2,512], index: 3, kind: input, shape index: {}]   ;;  %s1153_s4 = inlined_call_operand.hbm [shape: f32[2,512], index: 4, kind: input, shape index: {}]   ;;  %s1154_s5 = inlined_call_operand.vmem [shape: f32[2,512], index: 5, kind: input, shape index: {}]   ;;  %s1155_s6 = inlined_call_operand.hbm [shape: f32[2,2,512], index: 6, kind: output, shape index: {0}]   ;;  %s1156_s7 = inlined_call_operand.hbm [shape: f32[2,2,512], index: 7, kind: output, shape index: {1}]  }
   0x1   :  { %14 = vsyncpa [#allocation6], 0 }
   0x2   :  { %15 = vsyncpa [#allocation9], 0 }
   0x3   :  { %16 = vsyncpa [#allocation4], 0 }
   0x4   :  { %17 = vsyncpa [#allocation12], 0  ;;  %s864_s24 = smov [#allocation5]   ;;  %s865_s26 = smov [#allocation2]  }
   0x5   :  { %s35_s25 = sshll.u32 %s864_s24, 4  ;;  %s23_s27 = sshll.u32 %s865_s26, 4  ;;  %s36_s25 = int_to_ptr.vmem [resolvable:$true] %s35_s25  ;;  %s914_s27 = int_to_ptr.vmem [resolvable:$true] %s23_s27 }
   0x6   :  { %s722_s30 = scalar_lea.hbm %s1150_s1, 256 }
   0x7   :  { %p723_p0 = scmp.ne.s32.totalorder %s1150_s1, %s722_s30  ;;  %p726_p1 = scmp.lt.u32.totalorder %s722_s30, %s1150_s1 }
   0x9   :  { %p728_p2 = pnand %p726_p1, %p723_p0 }
   0xb   :  { %731 = shalt.err (!%p728_p2)
}
   0xc   :  { %s732_s12 = scalar_lea.vmem %s36_s25, 256  ;;  %p737_p4 = scmp.lt.s32.totalorder %s36_s25, %s36_s25 }
   0xd   :  { %p733_p3 = scmp.ne.s32.totalorder %s36_s25, %s732_s12  ;;  %p738_p5 = scmp.lt.s32.totalorder %s732_s12, %s732_s12 }
   0xf   :  { %p739_p6 = por %p738_p5, %p737_p4 }
  0x11   :  { %p740_p7 = pnand %p739_p6, %p733_p3 }
  0x13   :  { %743 = shalt.err (!%p740_p7)
}
  0x14   :  { %s866_s13 = smov 128   ;;  %s867_s14 = smov 8  }
  0x15   :  { %41 = dma.hbm_to_vmem [thread:$0]  %s1150_s1, 256, %s36_s25, [#allocation6], %s866_s13, %s866_s13, %s867_s14  }
  0x16   :  { %s744_s19 = scalar_lea.hbm %s1149_s0, 256 }
  0x17   :  { %p745_p8 = scmp.ne.s32.totalorder %s1149_s0, %s744_s19  ;;  %p748_p9 = scmp.lt.u32.totalorder %s744_s19, %s1149_s0 }
  0x19   :  { %p750_p10 = pnand %p748_p9, %p745_p8 }
  0x1b   :  { %753 = shalt.err (!%p750_p10)
}
  0x1c   :  { %s754_s24 = scalar_lea.vmem %s914_s27, 256  ;;  %p759_p12 = scmp.lt.s32.totalorder %s914_s27, %s914_s27 }
  0x1d   :  { %p755_p11 = scmp.ne.s32.totalorder %s914_s27, %s754_s24  ;;  %p760_p13 = scmp.lt.s32.totalorder %s754_s24, %s754_s24 }
  0x1f   :  { %p761_p0 = por %p760_p13, %p759_p12 }
  0x21   :  { %p762_p1 = pnand %p761_p0, %p755_p11 }
  0x23   :  { %765 = shalt.err (!%p762_p1)
}
  0x24   :  { %29 = dma.hbm_to_vmem [thread:$0]  %s1149_s0, 256, %s914_s27, [#allocation3], %s866_s13, %s866_s13, %s867_s14  }
  0x25   :  { %s868_s26 = smov [#allocation7]   ;;  %s869_s29 = smov [#allocation8]  }
  0x26   :  { %s48_s28 = sshll.u32 %s868_s26, 4  ;;  %s60_s30 = sshll.u32 %s869_s29, 4  ;;  %s49_s28 = int_to_ptr.vmem [resolvable:$true] %s48_s28  ;;  %s61_s30 = int_to_ptr.vmem [resolvable:$true] %s60_s30 }
  0x27   :  { %s766_s10 = scalar_lea.hbm %s1151_s2, 128 }
  0x28   :  { %p767_p2 = scmp.ne.s32.totalorder %s1151_s2, %s766_s10  ;;  %p770_p3 = scmp.lt.u32.totalorder %s766_s10, %s1151_s2 }
  0x2a   :  { %p772_p4 = pnand %p770_p3, %p767_p2 }
  0x2c   :  { %775 = shalt.err (!%p772_p4)
}
  0x2d   :  { %s776_s0 = scalar_lea.vmem %s49_s28, 128  ;;  %p781_p6 = scmp.lt.s32.totalorder %s49_s28, %s49_s28 }
  0x2e   :  { %p777_p5 = scmp.ne.s32.totalorder %s49_s28, %s776_s0  ;;  %p782_p7 = scmp.lt.s32.totalorder %s776_s0, %s776_s0 }
  0x30   :  { %p783_p8 = por %p782_p7, %p781_p6 }
  0x32   :  { %p784_p9 = pnand %p783_p8, %p777_p5 }
  0x34   :  { %787 = shalt.err (!%p784_p9)
}
  0x35   :  { %51 = dma.hbm_to_vmem [thread:$0]  %s1151_s2, 128, %s49_s28, [#allocation6]  }
  0x36   :  { %s788_s20 = scalar_lea.hbm %s1153_s4, 128 }
  0x37   :  { %p789_p10 = scmp.ne.s32.totalorder %s1153_s4, %s788_s20  ;;  %p792_p11 = scmp.lt.u32.totalorder %s788_s20, %s1153_s4 }
  0x39   :  { %p794_p12 = pnand %p792_p11, %p789_p10 }
  0x3b   :  { %797 = shalt.err (!%p794_p12)
}
  0x3c   :  { %s798_s1 = scalar_lea.vmem %s61_s30, 128  ;;  %p803_p0 = scmp.lt.s32.totalorder %s61_s30, %s61_s30 }
  0x3d   :  { %p799_p13 = scmp.ne.s32.totalorder %s61_s30, %s798_s1  ;;  %p804_p1 = scmp.lt.s32.totalorder %s798_s1, %s798_s1 }
  0x3f   :  { %p805_p2 = por %p804_p1, %p803_p0 }
  0x41   :  { %p806_p3 = pnand %p805_p2, %p799_p13 }
  0x43   :  { %809 = shalt.err (!%p806_p3)
}
  0x44   :  { %63 = dma.hbm_to_vmem [thread:$0]  %s1153_s4, 128, %s61_s30, [#allocation9]  }
  0x45   :  { %854 = dma.done.wait [#allocation3], 256  }
  0x46   :  { %855 = vsyncadd [#allocation3], 4294967040 }
  0x47   :  { %856 = dma.done.wait [#allocation6], 384  }
  0x48   :  { %857 = vsyncadd [#allocation6], 4294966912 }
  0x49   :  { %858 = dma.done.wait [#allocation9], 128  }
  0x4a   :  { %859 = vsyncadd [#allocation9], 4294967168  ;;  %v86_v0 = vlaneseq  ;;  %v870_v1 = vmov 1983009808   ;;  %v980_v6 = vld [vmem:[#allocation2] sm:$0xff]  ;;  %vm124_vm0 = vcmask 1041408  }
  0x4b   :  { %v84_v2 = vunpack.c.l.s4 %v870_v1  ;;  %v982_v7 = vld [vmem:[#allocation5] sm:$0xff]  ;;  %v984_v8 = vld [vmem:[#allocation2 + $0x8] sm:$0xff]  ;;  %v82_v9 = vcombine.high %v980_v6, %v980_v6  ;;  %v994_v13 = vld [vmem:[#allocation5 + $0x8] sm:$0xff]  ;;  %v871_v58 = vmov 269488144  }
  0x4c   :  { %v975_v3 = vshrl.u32 %v86_v0, 7  ;;  %v375_v11 = vcombine.high %v982_v7, %v982_v7  ;;  %v99_v14 = vcombine.high %v984_v8, %v984_v8  ;;  %v392_v16 = vcombine.high %v994_v13, %v994_v13 }
  0x4d   :  { %v85_v4 = vunpack.c.0.s8 %v84_v2  ;;  %v148_v59 = vunpack.c.l.s4 %v871_v58 }
  0x4f   :  { %v978_v5 = vsub.s32 %v85_v4, %v975_v3  ;;  %v149_v60 = vunpack.c.0.s8 %v148_v59 }
  0x51   :  { %v89_v10 = vrot.slane %v980_v6, %v978_v5  ;;  %v382_v12 = vrot.slane %v982_v7, %v978_v5  ;;  %v106_v15 = vrot.slane %v984_v8, %v978_v5  ;;  %v399_v17 = vrot.slane %v994_v13, %v978_v5 }
  0x52   :  { %v96_v18 = vrot.slane %v82_v9, %v978_v5  ;;  %v389_v21 = vrot.slane %v375_v11, %v978_v5  ;;  %v113_v24 = vrot.slane %v99_v14, %v978_v5  ;;  %v406_v43 = vrot.slane %v392_v16, %v978_v5 }
  0x53   :  { %v97_v19 = vcombine.high %v89_v10, %v89_v10  ;;  %v125_v20 = vsel %vm124_vm0, %v89_v10, 0.0  ;;  %v390_v22 = vcombine.high %v382_v12, %v382_v12  ;;  %v417_v23 = vsel %vm124_vm0, %v382_v12, 0.0 }
  0x54   :  { %v114_v25 = vcombine.high %v106_v15, %v106_v15  ;;  %v98_v26 = vcombine.high %v96_v18, %v96_v18  ;;  %v128_v28 = vsel %vm124_vm0, %v96_v18, 0.0  ;;  %v391_v29 = vcombine.high %v389_v21, %v389_v21 }
  0x55   :  { %v126_v27 = vsel %vm124_vm0, %v97_v19, 0.0  ;;  %v418_v31 = vsel %vm124_vm0, %v390_v22, 0.0  ;;  %v420_v32 = vsel %vm124_vm0, %v389_v21, 0.0  ;;  %v115_v33 = vcombine.high %v113_v24, %v113_v24 }
  0x56   :  { %v127_v30 = vadd.f32 %v126_v27, %v125_v20  ;;  %v130_v34 = vsel %vm124_vm0, %v98_v26, 0.0  ;;  %v419_v35 = vadd.f32 %v418_v31, %v417_v23  ;;  %v134_v36 = vsel %vm124_vm0, %v106_v15, 0.0 }
  0x57   :  { %v422_v38 = vsel %vm124_vm0, %v391_v29, 0.0  ;;  %v135_v39 = vsel %vm124_vm0, %v114_v25, 0.0  ;;  %v137_v40 = vsel %vm124_vm0, %v113_v24, 0.0  ;;  %v407_v44 = vcombine.high %v399_v17, %v399_v17 }
  0x58   :  { %v129_v37 = vadd.f32 %v128_v28, %v127_v30  ;;  %v421_v41 = vadd.f32 %v420_v32, %v419_v35  ;;  %v136_v42 = vadd.f32 %v135_v39, %v134_v36  ;;  %v139_v46 = vsel %vm124_vm0, %v115_v33, 0.0 }
  0x59   :  { %v426_v47 = vsel %vm124_vm0, %v399_v17, 0.0  ;;  %v408_v50 = vcombine.high %v406_v43, %v406_v43  ;;  %v427_v51 = vsel %vm124_vm0, %v407_v44, 0.0  ;;  %v429_v53 = vsel %vm124_vm0, %v406_v43, 0.0 }
  0x5a   :  { %v131_v45 = vadd.f32 %v130_v34, %v129_v37  ;;  %v423_v48 = vadd.f32 %v422_v38, %v421_v41  ;;  %v138_v49 = vadd.f32 %v137_v40, %v136_v42  ;;  %v428_v52 = vadd.f32 %v427_v51, %v426_v47 }
  0x5b   :  { %v431_v55 = vsel %vm124_vm0, %v408_v50, 0.0  ;;  %v152_v61 = vsub.s32 %v149_v60, %v975_v3 }
  0x5c   :  { %132 = vadd.xlane.f32.xlu0 %v131_v45  ;;  %424 = vadd.xlane.f32.xlu1 %v423_v48  ;;  %v140_v54 = vadd.f32 %v139_v46, %v138_v49  ;;  %v430_v56 = vadd.f32 %v429_v53, %v428_v52 }
  0x5e   :  { %v432_v57 = vadd.f32 %v431_v55, %v430_v56 }
  0x60   :  { %141 = vadd.xlane.f32.xlu0 %v140_v54  ;;  %433 = vadd.xlane.f32.xlu1 %v432_v57 }
  0xe9   :  { %v133_v62 = vpop.xlane.xlu0 %132  ;;  %v425_v0 = vpop.xlane.xlu1 %424 }
  0xea   :  { %v1025_v63 = vmul.f32 0.001953125, %v133_v62  ;;  %v1027_v1 = vmul.f32 0.001953125, %v425_v0 }
  0xec   :  { %v153_v2 = vrot.slane %v1025_v63, %v152_v61  ;;  %v445_v9 = vrot.slane %v1027_v1, %v152_v61 }
  0xed   :  { %v142_v4 = vpop.xlane.xlu0 %141  ;;  %v434_v12 = vpop.xlane.xlu1 %433 }
  0xee   :  { %v1031_v10 = vmul.f32 0.001953125, %v142_v4  ;;  %v163_v11 = vsub.f32 %v980_v6, %v153_v2  ;;  %v455_v14 = vsub.f32 %v982_v7, %v445_v9  ;;  %v1035_v15 = vmul.f32 0.001953125, %v434_v12 }
  0xf0   :  { %v165_v3 = vmul.f32 %v163_v11, %v163_v11  ;;  %v160_v16 = vrot.slane %v1031_v10, %v152_v61  ;;  %v457_v17 = vmul.f32 %v455_v14, %v455_v14  ;;  %v452_v21 = vrot.slane %v1035_v15, %v152_v61 }
  0xf2   :  { %v169_v18 = vcombine.high %v165_v3, %v165_v3  ;;  %v176_v19 = vrot.slane %v165_v3, %v978_v5  ;;  %v164_v20 = vsub.f32 %v984_v8, %v160_v16  ;;  %v461_v22 = vcombine.high %v457_v17, %v457_v17 }
  0xf3   :  { %v468_v23 = vrot.slane %v457_v17, %v978_v5  ;;  %v456_v30 = vsub.f32 %v994_v13, %v452_v21 }
  0xf4   :  { %v183_v24 = vrot.slane %v169_v18, %v978_v5  ;;  %v184_v25 = vcombine.high %v176_v19, %v176_v19  ;;  %v166_v26 = vmul.f32 %v164_v20, %v164_v20  ;;  %v475_v27 = vrot.slane %v461_v22, %v978_v5  ;;  %v235_v18 = vld [vmem:[#allocation7] sm:$0xff] }
  0xf5   :  { %v476_v28 = vcombine.high %v468_v23, %v468_v23  ;;  %v503_v29 = vsel %vm124_vm0, %v468_v23, 0.0  ;;  %v211_v32 = vsel %vm124_vm0, %v176_v19, 0.0  ;;  %v458_v44 = vmul.f32 %v456_v30, %v456_v30 }
  0xf6   :  { %v185_v31 = vcombine.high %v183_v24, %v183_v24  ;;  %v212_v33 = vsel %vm124_vm0, %v184_v25, 0.0  ;;  %v186_v34 = vcombine.high %v166_v26, %v166_v26  ;;  %v477_v36 = vcombine.high %v475_v27, %v475_v27 }
  0xf7   :  { %v213_v35 = vadd.f32 %v212_v33, %v211_v32  ;;  %v504_v37 = vsel %vm124_vm0, %v476_v28, 0.0  ;;  %v506_v38 = vsel %vm124_vm0, %v475_v27, 0.0  ;;  %v214_v39 = vsel %vm124_vm0, %v183_v24, 0.0  ;;  %v527_v24 = vld [vmem:[%s1152_s3] sm:$0xff]  ;;  %s872_s3 = smov [#allocation10]  }
  0xf8   :  { %v505_v40 = vadd.f32 %v504_v37, %v503_v29  ;;  %v193_v41 = vrot.slane %v166_v26, %v978_v5  ;;  %v200_v42 = vrot.slane %v186_v34, %v978_v5  ;;  %v216_v45 = vsel %vm124_vm0, %v185_v31, 0.0  ;;  %s668_s28 = sshll.u32 %s872_s3, 4  ;;  %s669_s28 = int_to_ptr.vmem [resolvable:$true] %s668_s28 }
  0xf9   :  { %v215_v43 = vadd.f32 %v214_v39, %v213_v35  ;;  %v508_v49 = vsel %vm124_vm0, %v477_v36, 0.0  ;;  %v478_v50 = vcombine.high %v458_v44, %v458_v44  ;;  %v485_v51 = vrot.slane %v458_v44, %v978_v5  ;;  %s810_s8 = scalar_lea.vmem %s669_s28, 256  ;;  %p815_p5 = scmp.lt.s32.totalorder %s669_s28, %s669_s28 }
  0xfa   :  { %v507_v46 = vadd.f32 %v506_v38, %v505_v40  ;;  %v201_v47 = vcombine.high %v193_v41, %v193_v41  ;;  %v202_v52 = vcombine.high %v200_v42, %v200_v42  ;;  %v220_v53 = vsel %vm124_vm0, %v193_v41, 0.0  ;;  %p811_p4 = scmp.ne.s32.totalorder %s669_s28, %s810_s8  ;;  %p816_p6 = scmp.lt.s32.totalorder %s810_s8, %s810_s8 }
  0xfb   :  { %v217_v48 = vadd.f32 %v216_v45, %v215_v43  ;;  %v492_v56 = vrot.slane %v478_v50, %v978_v5  ;;  %v493_v57 = vcombine.high %v485_v51, %v485_v51  ;;  %v512_v58 = vsel %vm124_vm0, %v485_v51, 0.0 }
  0xfc   :  { %v221_v54 = vsel %vm124_vm0, %v201_v47, 0.0  ;;  %v509_v59 = vadd.f32 %v508_v49, %v507_v46  ;;  %v223_v60 = vsel %vm124_vm0, %v200_v42, 0.0  ;;  %v225_v4 = vsel %vm124_vm0, %v202_v52, 0.0  ;;  %p817_p7 = por %p816_p6, %p815_p5 }
  0xfd   :  { %218 = vadd.xlane.f32.xlu0 %v217_v48  ;;  %v222_v55 = vadd.f32 %v221_v54, %v220_v53  ;;  %v494_v62 = vcombine.high %v492_v56, %v492_v56  ;;  %v513_v0 = vsel %vm124_vm0, %v493_v57, 0.0  ;;  %v515_v2 = vsel %vm124_vm0, %v492_v56, 0.0 }
  0xfe   :  { %v514_v9 = vadd.f32 %v513_v0, %v512_v58  ;;  %v237_v21 = vcombine.high %v235_v18, %v235_v18  ;;  %v244_v27 = vrot.slane %v235_v18, %v978_v5  ;;  %v529_v30 = vcombine.high %v527_v24, %v527_v24  ;;  %p818_p8 = pnand %p817_p7, %p811_p4 }
  0xff   :  { %v224_v61 = vadd.f32 %v223_v60, %v222_v55  ;;  %v517_v14 = vsel %vm124_vm0, %v494_v62, 0.0  ;;  %v536_v33 = vrot.slane %v527_v24, %v978_v5 }
 0x100   :  { %v516_v12 = vadd.f32 %v515_v2, %v514_v9  ;;  %v251_v28 = vrot.slane %v237_v21, %v978_v5  ;;  %v252_v34 = vcombine.high %v244_v27, %v244_v27  ;;  %v543_v37 = vrot.slane %v529_v30, %v978_v5 }
 0x101   :  { %510 = vadd.xlane.f32.xlu0 %v509_v59  ;;  %v226_v11 = vadd.f32 %v225_v4, %v224_v61  ;;  %v544_v39 = vcombine.high %v536_v33, %v536_v33 }
 0x102   :  { %v518_v3 = vadd.f32 %v517_v14, %v516_v12  ;;  %v253_v35 = vcombine.high %v251_v28, %v251_v28  ;;  %v545_v44 = vcombine.high %v543_v37, %v543_v37  ;;  %v266_v12 = vld [vmem:[#allocation8] sm:$0xff] }
 0x103   :  { %227 = vadd.xlane.f32.xlu1 %v226_v11 }
 0x107   :  { %519 = vadd.xlane.f32.xlu1 %v518_v3 }
 0x18a   :  { %v219_v16 = vpop.xlane.xlu0 %218 }
 0x18b   :  { %v229_v17 = vmul.f32 0.001953125, %v219_v16 }
 0x18d   :  { %v231_v19 = vadd.f32 1e-05, %v229_v17 }
 0x18e   :  { %v511_v20 = vpop.xlane.xlu0 %510 }
 0x18f   :  { %714 = vrsqrt.f32 %v231_v19  ;;  %v521_v22 = vmul.f32 0.001953125, %v511_v20 }
 0x190   :  { %v228_v23 = vpop.xlane.xlu1 %227 }
 0x191   :  { %v230_v25 = vmul.f32 0.001953125, %v228_v23  ;;  %v523_v26 = vadd.f32 1e-05, %v521_v22 }
 0x193   :  { %v232_v29 = vadd.f32 1e-05, %v230_v25  ;;  %716 = vrsqrt.f32 %v523_v26 }
 0x194   :  { %v520_v31 = vpop.xlane.xlu1 %519 }
 0x195   :  { %718 = vrsqrt.f32 %v232_v29  ;;  %v522_v32 = vmul.f32 0.001953125, %v520_v31 }
 0x197   :  { %v524_v36 = vadd.f32 1e-05, %v522_v32 }
 0x199   :  { %v715_v38 = vpop.eup %714  ;;  %720 = vrsqrt.f32 %v524_v36 }
 0x19a   :  { %v258_v40 = vmul.f32 %v715_v38, %v244_v27  ;;  %v259_v41 = vmul.f32 %v715_v38, %v252_v34  ;;  %v260_v42 = vmul.f32 %v715_v38, %v251_v28  ;;  %v261_v43 = vmul.f32 %v715_v38, %v253_v35 }
 0x19c   :  { %v267_v45 = vmul.f32 %v258_v40, %v1025_v63  ;;  %v268_v46 = vmul.f32 %v259_v41, %v1025_v63  ;;  %v269_v47 = vmul.f32 %v260_v42, %v1025_v63  ;;  %v270_v48 = vmul.f32 %v261_v43, %v1025_v63 }
 0x19d   :  { %v717_v49 = vpop.eup %716  ;;  %v329_v50 = vcombine.low %v258_v40, %v259_v41  ;;  %v330_v51 = vcombine.low %v260_v42, %v261_v43 }
 0x19e   :  { %v283_v52 = vcombine.low %v267_v45, %v268_v46  ;;  %v284_v53 = vcombine.low %v269_v47, %v270_v48  ;;  %v1076_v54 = vmul.f32 %v717_v49, %v536_v33  ;;  %v1078_v55 = vmul.f32 %v717_v49, %v544_v39 }
 0x19f   :  { %v719_v56 = vpop.eup %718  ;;  %v337_v57 = vrot.slane %v329_v50, %v978_v5  ;;  %v344_v58 = vrot.slane %v330_v51, %v978_v5  ;;  %v552_v59 = vmul.f32 %v717_v49, %v543_v37  ;;  %v553_v60 = vmul.f32 %v717_v49, %v545_v44 }
 0x1a0   :  { %v262_v61 = vmul.f32 %v719_v56, %v244_v27  ;;  %v263_v62 = vmul.f32 %v719_v56, %v252_v34  ;;  %v264_v0 = vmul.f32 %v719_v56, %v251_v28  ;;  %v265_v63 = vmul.f32 %v719_v56, %v253_v35 }
 0x1a1   :  { %v291_v2 = vrot.slane %v283_v52, %v978_v5  ;;  %v298_v4 = vrot.slane %v284_v53, %v978_v5  ;;  %v345_v9 = vcombine.low %v337_v57, %v344_v58  ;;  %v559_v11 = vmul.f32 %v1076_v54, %v1027_v1 }
 0x1a2   :  { %v271_v14 = vmul.f32 %v262_v61, %v1031_v10  ;;  %v272_v3 = vmul.f32 %v263_v62, %v1031_v10  ;;  %v273_v16 = vmul.f32 %v264_v0, %v1031_v10  ;;  %v274_v17 = vmul.f32 %v265_v63, %v1031_v10 }
 0x1a3   :  { %v721_v18 = vpop.eup %720  ;;  %v299_v19 = vcombine.low %v291_v2, %v298_v4  ;;  %v346_v20 = vcombine.low %v262_v61, %v263_v62  ;;  %v347_v21 = vcombine.low %v264_v0, %v265_v63  ;;  %v365_v22 = vmul.f32 %v345_v9, %v980_v6 }
 0x1a4   :  { %v300_v23 = vcombine.low %v271_v14, %v272_v3  ;;  %v301_v24 = vcombine.low %v273_v16, %v274_v17  ;;  %v554_v25 = vmul.f32 %v721_v18, %v536_v33  ;;  %v555_v26 = vmul.f32 %v721_v18, %v544_v39 }
 0x1a5   :  { %v319_v27 = vsub.f32 %v266_v12, %v299_v19  ;;  %v354_v28 = vrot.slane %v346_v20, %v978_v5  ;;  %v361_v29 = vrot.slane %v347_v21, %v978_v5  ;;  %v556_v30 = vmul.f32 %v721_v18, %v543_v37 }
 0x1a6   :  { %v308_v31 = vrot.slane %v300_v23, %v978_v5  ;;  %v315_v10 = vrot.slane %v301_v24, %v978_v5  ;;  %v557_v32 = vmul.f32 %v721_v18, %v545_v44  ;;  %v560_v34 = vmul.f32 %v1078_v55, %v1027_v1 }
 0x1a7   :  { %v362_v35 = vcombine.low %v354_v28, %v361_v29  ;;  %v367_v6 = vadd.f32 %v365_v22, %v319_v27  ;;  %v561_v36 = vmul.f32 %v552_v59, %v1027_v1  ;;  %v562_v33 = vmul.f32 %v553_v60, %v1027_v1 }
 0x1a8   :  { %v316_v38 = vcombine.low %v308_v31, %v315_v10  ;;  %v563_v39 = vmul.f32 %v554_v25, %v1035_v15  ;;  %v564_v40 = vmul.f32 %v555_v26, %v1035_v15  ;;  %v565_v37 = vmul.f32 %v556_v30, %v1035_v15 }
 0x1a9   :  { %v366_v41 = vmul.f32 %v362_v35, %v984_v8  ;;  %369 = vst [vmem:[#allocation10] sm:$0xff] %v367_v6  ;;  %v566_v42 = vmul.f32 %v557_v32, %v1035_v15  ;;  %v575_v43 = vcombine.low %v559_v11, %v560_v34  ;;  %v576_v44 = vcombine.low %v561_v36, %v562_v33  ;;  %v558_v15 = vld [vmem:[%s1154_s5] sm:$0xff] }
 0x1aa   :  { %v320_v45 = vsub.f32 %v266_v12, %v316_v38  ;;  %v592_v46 = vcombine.low %v563_v39, %v564_v40  ;;  %v621_v1 = vcombine.low %v1076_v54, %v1078_v55  ;;  %v622_v47 = vcombine.low %v552_v59, %v553_v60 }
 0x1ab   :  { %v583_v48 = vrot.slane %v575_v43, %v978_v5  ;;  %v590_v49 = vrot.slane %v576_v44, %v978_v5  ;;  %v593_v50 = vcombine.low %v565_v37, %v566_v42  ;;  %v638_v51 = vcombine.low %v554_v25, %v555_v26 }
 0x1ac   :  { %v368_v8 = vadd.f32 %v366_v41, %v320_v45  ;;  %v600_v52 = vrot.slane %v592_v46, %v978_v5  ;;  %v629_v53 = vrot.slane %v621_v1, %v978_v5  ;;  %v636_v56 = vrot.slane %v622_v47, %v978_v5 }
 0x1ad   :  { %v591_v54 = vcombine.low %v583_v48, %v590_v49  ;;  %v607_v55 = vrot.slane %v593_v50, %v978_v5  ;;  %v639_v57 = vcombine.low %v556_v30, %v557_v32  ;;  %v646_v58 = vrot.slane %v638_v51, %v978_v5 }
 0x1ae   :  { %370 = vst [vmem:[#allocation10 + $0x8] sm:$0xff] %v368_v8  ;;  %v637_v59 = vcombine.low %v629_v53, %v636_v56 }
 0x1af   :  { %821 = shalt.err (!%p818_p8)
}
 0x1b0   :  { %s822_s10 = scalar_lea.hbm %s1155_s6, 256 }
 0x1b1   :  { %p823_p9 = scmp.ne.s32.totalorder %s1155_s6, %s822_s10  ;;  %p826_p10 = scmp.lt.u32.totalorder %s822_s10, %s1155_s6 }
 0x1b3   :  { %p828_p11 = pnand %p826_p10, %p823_p9 }
 0x1b5   :  { %831 = shalt.err (!%p828_p11)
}
 0x1b6   :  { %674 = dma.vmem_to_hbm [thread:$0]  %s669_s28, 256, %s1155_s6, [#allocation4], %s866_s13, %s866_s13, %s867_s14   ;;  %v608_v60 = vcombine.low %v600_v52, %v607_v55  ;;  %v611_v61 = vsub.f32 %v558_v15, %v591_v54  ;;  %v653_v62 = vrot.slane %v639_v57, %v978_v5  ;;  %v657_v0 = vmul.f32 %v637_v59, %v982_v7 }
 0x1b7   :  { %s873_s17 = smov [#allocation11]  }
 0x1b8   :  { %v612_v63 = vsub.f32 %v558_v15, %v608_v60  ;;  %v654_v2 = vcombine.low %v646_v58, %v653_v62  ;;  %v659_v4 = vadd.f32 %v657_v0, %v611_v61  ;;  %s680_s18 = sshll.u32 %s873_s17, 4  ;;  %s681_s18 = int_to_ptr.vmem [resolvable:$true] %s680_s18 }
 0x1b9   :  { %s832_s19 = scalar_lea.vmem %s681_s18, 256  ;;  %p837_p13 = scmp.lt.s32.totalorder %s681_s18, %s681_s18 }
 0x1ba   :  { %v658_v9 = vmul.f32 %v654_v2, %v994_v13  ;;  %661 = vst [vmem:[#allocation11] sm:$0xff] %v659_v4  ;;  %p833_p12 = scmp.ne.s32.totalorder %s681_s18, %s832_s19  ;;  %p838_p0 = scmp.lt.s32.totalorder %s832_s19, %s832_s19 }
 0x1bc   :  { %v660_v11 = vadd.f32 %v658_v9, %v612_v63  ;;  %p839_p1 = por %p838_p0, %p837_p13 }
 0x1be   :  { %662 = vst [vmem:[#allocation11 + $0x8] sm:$0xff] %v660_v11  ;;  %p840_p2 = pnand %p839_p1, %p833_p12 }
 0x1c0   :  { %843 = shalt.err (!%p840_p2)
}
 0x1c1   :  { %s844_s21 = scalar_lea.hbm %s1156_s7, 256 }
 0x1c2   :  { %p845_p3 = scmp.ne.s32.totalorder %s1156_s7, %s844_s21  ;;  %p848_p4 = scmp.lt.u32.totalorder %s844_s21, %s1156_s7 }
 0x1c4   :  { %p850_p5 = pnand %p848_p4, %p845_p3 }
 0x1c6   :  { %853 = shalt.err (!%p850_p5)
}
 0x1c7   :  { %686 = dma.vmem_to_hbm [thread:$0]  %s681_s18, 256, %s1156_s7, [#allocation12], %s866_s13, %s866_s13, %s867_s14  }
 0x1c8   :  { %860 = dma.done.wait [#allocation4], 256  }
 0x1c9   :  { %861 = vsyncadd [#allocation4], 4294967040 }
 0x1ca   :  { %862 = dma.done.wait [#allocation12], 256  }
 0x1cb   :  { %863 = vsyncadd [#allocation12], 4294967040 }
 0x1cc   :  { %693 = vsyncpa [#allocation3], 1 }
 0x1cd   :  { %694 = vsyncpa [#allocation6], 1 }
 0x1ce   :  { %695 = vsyncpa [#allocation9], 1 }
 0x1cf   :  { %696 = vsyncpa [#allocation4], 1 }
 0x1d0   :  { %697 = vsyncpa [#allocation12], 1 }

</bundles_post_ra>
